<compile_context>
chip_gen: v7x
topology: tpu7x:2x2x1
jax: 0.10.0
libtpu: 0.0.40
codegen_flags: <defaults>
</compile_context>

<pallas_src>
import functools

import jax
import jax.numpy as jnp
from jax.experimental import pallas as pl
from jax.experimental.pallas import tpu as pltpu

LN_EPS = 1e-12  # BertLayerNorm eps


def _round_up(x, m):
    return ((x + m - 1) // m) * m


_COMPILER_PARAMS = pltpu.CompilerParams(
    dimension_semantics=("parallel",),
    vmem_limit_bytes=32 * 1024 * 1024,
)


# --------------------------------------------------------------------------
# Kernel 1: fused multi-input Linear (+optional tanh) + BertLayerNorm
#   y = LN(tanh(sum_i x_i @ W_i + b))   or   LN(sum_i x_i @ W_i + b)
# Row-tiled over M; weights/bias/gamma/beta resident across the grid.
# Matmuls in bf16 -> f32 accumulate; LN in f32 with rsqrt epilogue.
# --------------------------------------------------------------------------
def _fused_linear_ln_kernel(*refs, n_in, use_tanh):
    x_refs = refs[:n_in]
    w_refs = refs[n_in:2 * n_in]
    b_ref, g_ref, bt_ref, o_ref = refs[2 * n_in:]

    acc = jnp.dot(x_refs[0][...], w_refs[0][...],
                  preferred_element_type=jnp.float32)
    for xr, wr in zip(x_refs[1:], w_refs[1:]):
        acc = acc + jnp.dot(xr[...], wr[...],
                            preferred_element_type=jnp.float32)
    y = acc + b_ref[...]
    if use_tanh:
        y = jnp.tanh(y)

    u = jnp.mean(y, axis=-1, keepdims=True)
    var = jnp.maximum(jnp.mean(y * y, axis=-1, keepdims=True) - u * u, 0.0)
    inv = jax.lax.rsqrt(var + LN_EPS)            # EUP; divide becomes a VPU mul
    o_ref[...] = g_ref[...] * ((y - u) * inv) + bt_ref[...]


def fused_linear_ln(xs, ws, b, gamma, beta, *, use_tanh, tile_m=256):
    """xs: list of (n, din_i) f32/bf16; ws: list of (din_i, dout) bf16."""
    n = xs[0].shape[0]
    dout = ws[0].shape[1]
    n_in = len(xs)

    tile = min(tile_m, _round_up(n, 16))         # bf16 sublane-friendly tile
    n_pad = _round_up(n, tile)

    xs_p = [jnp.pad(x.astype(jnp.bfloat16), ((0, n_pad - n), (0, 0)))
            for x in xs]
    ws_b = [w.astype(jnp.bfloat16) for w in ws]

    in_specs = (
        [pl.BlockSpec((tile, x.shape[1]), lambda i: (i, 0)) for x in xs_p]
        + [pl.BlockSpec(w.shape, lambda i: (0, 0)) for w in ws_b]   # resident
        + [pl.BlockSpec((1, dout), lambda i: (0, 0))] * 3           # b, g, beta
    )

    kernel = functools.partial(_fused_linear_ln_kernel,
                               n_in=n_in, use_tanh=use_tanh)
    out = pl.pallas_call(
        kernel,
        out_shape=jax.ShapeDtypeStruct((n_pad, dout), jnp.float32),
        grid=(n_pad // tile,),
        in_specs=in_specs,
        out_specs=pl.BlockSpec((tile, dout), lambda i: (i, 0)),
        compiler_params=_COMPILER_PARAMS,
    )(*xs_p, *ws_b,
      b.reshape(1, -1), gamma.reshape(1, -1), beta.reshape(1, -1))
    return out[:n]


# --------------------------------------------------------------------------
# Kernel 2: fused elementwise multiply + BertLayerNorm  (vis_lang_LayerNorm)
# --------------------------------------------------------------------------
def _mul_ln_kernel(a_ref, b_ref, g_ref, bt_ref, o_ref):
    y = a_ref[...] * b_ref[...]
    u = jnp.mean(y, axis=-1, keepdims=True)
    var = jnp.maximum(jnp.mean(y * y, axis=-1, keepdims=True) - u * u, 0.0)
    inv = jax.lax.rsqrt(var + LN_EPS)
    o_ref[...] = g_ref[...] * ((y - u) * inv) + bt_ref[...]


def mul_ln(a, b, gamma, beta, *, tile_m=256):
    n, h = a.shape
    tile = min(tile_m, _round_up(n, 8))
    n_pad = _round_up(n, tile)
    a_p = jnp.pad(a, ((0, n_pad - n), (0, 0)))
    b_p = jnp.pad(b, ((0, n_pad - n), (0, 0)))
    out = pl.pallas_call(
        _mul_ln_kernel,
        out_shape=jax.ShapeDtypeStruct((n_pad, h), jnp.float32),
        grid=(n_pad // tile,),
        in_specs=[
            pl.BlockSpec((tile, h), lambda i: (i, 0)),
            pl.BlockSpec((tile, h), lambda i: (i, 0)),
            pl.BlockSpec((1, h), lambda i: (0, 0)),
            pl.BlockSpec((1, h), lambda i: (0, 0)),
        ],
        out_specs=pl.BlockSpec((tile, h), lambda i: (i, 0)),
        compiler_params=_COMPILER_PARAMS,
    )(a_p, b_p, gamma.reshape(1, -1), beta.reshape(1, -1))
    return out[:n]


# --------------------------------------------------------------------------
# Kernel 3: Mattn-style candidate scoring.
#   scores[b, :] = state_proj[b] @ W^T @ vis[b]^T ; mask ; softmax
# Re-associated so there is no in-kernel transpose and the candidate axis
# lives on the (128-padded) lane dimension -> lane-dense outputs.
# TODO(synk): the real Mattn class is not provided; this is a deterministic
# masked dot-product scoring head with the same I/O shapes.
# --------------------------------------------------------------------------
def _mattn_kernel(sp_ref, visT_ref, wT_ref, mask_ref, logit_ref, score_ref):
    sp = sp_ref[0]                                   # (1, H)  bf16
    visT = visT_ref[0]                               # (F, C_pad) bf16
    wT = wT_ref[...]                                 # (H, F) bf16

    q = jnp.dot(sp, wT, preferred_element_type=jnp.float32)          # (1, F)
    scores = jnp.dot(q.astype(jnp.bfloat16), visT,
                     preferred_element_type=jnp.float32)             # (1, C_pad)

    mask = mask_ref[0]                               # (1, C_pad) f32
    valid = mask > 0.5
    masked = jnp.where(valid, scores, jnp.float32(-1e9))
    m = jnp.max(masked, axis=-1, keepdims=True)
    e = jnp.where(valid, jnp.exp(masked - m), 0.0)
    denom = jnp.maximum(jnp.sum(e, axis=-1, keepdims=True),
                        jnp.float32(1e-20))          # all-masked guard (no NaN)
    probs = e * pl.reciprocal(denom, approx=True)

    logit_ref[0] = masked
    score_ref[0] = probs


def mattn_score(state_proj, vis_feat_bf16, w_m_bf16, vis_mask):
    b, c, fdim = vis_feat_bf16.shape
    h = state_proj.shape[-1]
    c_pad = _round_up(c, 128)

    # candidates on the lane axis, padded to a multiple of 128 (lane-dense out)
    visT = jnp.swapaxes(vis_feat_bf16, 1, 2)                     # (B, F, C)
    visT = jnp.pad(visT, ((0, 0), (0, 0), (0, c_pad - c)))
    mask3 = jnp.pad(vis_mask.astype(jnp.float32),
                    ((0, 0), (0, c_pad - c))).reshape(b, 1, c_pad)
    sp3 = state_proj.astype(jnp.bfloat16).reshape(b, 1, h)
    w_mT = jnp.swapaxes(w_m_bf16.astype(jnp.bfloat16), 0, 1)     # (H, F)

    logit, score = pl.pallas_call(
        _mattn_kernel,
        out_shape=(
            jax.ShapeDtypeStruct((b, 1, c_pad), jnp.float32),
            jax.ShapeDtypeStruct((b, 1, c_pad), jnp.float32),
        ),
        grid=(b,),
        in_specs=[
            pl.BlockSpec((1, 1, h), lambda i: (i, 0, 0)),
            pl.BlockSpec((1, fdim, c_pad), lambda i: (i, 0, 0)),
            pl.BlockSpec((h, fdim), lambda i: (0, 0)),            # resident
            pl.BlockSpec((1, 1, c_pad), lambda i: (i, 0, 0)),
        ],
        out_specs=(
            pl.BlockSpec((1, 1, c_pad), lambda i: (i, 0, 0)),
            pl.BlockSpec((1, 1, c_pad), lambda i: (i, 0, 0)),
        ),
        compiler_params=_COMPILER_PARAMS,
    )(sp3, visT, w_mT, mask3)
    return logit[:, 0, :c], score[:, 0, :c]


# --------------------------------------------------------------------------
# Stand-in for the pretrained PREVALENT VLN-BERT cross-modal encoder.
# TODO(synk): real `get_vlnbert_models(...)` loads an external pretrained
# LXMERT-style encoder; this minimal deterministic single-head cross-attention
# stand-in only reproduces the output interface.  The wrapper-owned
# img_projection + cand_LayerNorm run in the Pallas fused kernel.
# --------------------------------------------------------------------------
def vln_bert_stub(params, state_feats, lang_mask, vis_mask, img_feats_bf16):
    b, l, h = state_feats.shape
    c = img_feats_bf16.shape[1]

    vis_embeds = fused_linear_ln(
        [img_feats_bf16.reshape(b * c, -1)],
        [params["img_proj_w"]],
        params["img_proj_b"], params["cand_ln_g"], params["cand_ln_b"],
        use_tanh=False,
    ).reshape(b, c, h)

    q = state_feats[:, 0, :]
    scale = 1.0 / jnp.sqrt(jnp.float32(h))

    sl = jnp.einsum("bh,blh->bl", q, state_feats) * scale
    sl = jnp.where(lang_mask > 0.5, sl, -1e9)
    lang_probs = jax.nn.softmax(sl, axis=-1)
    attended_language = jnp.einsum("bl,blh->bh", lang_probs, state_feats)

    sv = jnp.einsum("bh,bch->bc", q, vis_embeds) * scale
    sv = jnp.where(vis_mask > 0.5, sv, -1e9)
    vis_probs = jax.nn.softmax(sv, axis=-1)
    attended_visual = jnp.einsum("bc,bch->bh", vis_probs, vis_embeds)

    h_t = jnp.tanh(q + attended_language + attended_visual)
    return h_t, sv, attended_language, attended_visual, lang_probs


# --------------------------------------------------------------------------
# VLNBERT "visual" mode forward
# --------------------------------------------------------------------------
def vlnbert_visual_forward(params, sentence, lang_mask, vis_mask,
                           action_feats, cand_feats, candidate_dep_normal,
                           angle_feat_size):
    a = angle_feat_size
    s0 = sentence[:, 0, :]

    # action_state_project (Linear + Tanh) + action_LayerNorm.
    # Split weight: sentence[:,0,:] @ W_sent + action_feats @ W_act — avoids
    # materializing cat(sentence[:,0,:], action_feats) in HBM.
    state_with_action = fused_linear_ln(
        [s0, action_feats],
        [params["asp_w_sent"], params["asp_w_act"]],
        params["asp_b"], params["action_ln_g"], params["action_ln_b"],
        use_tanh=True)
    state_feats = jnp.concatenate(
        [state_with_action[:, None, :], sentence[:, 1:, :]], axis=1)

    # drop_env (featdropout) in eval mode -> identity.
    cand_vis = cand_feats[..., :-a]
    cand_angle = cand_feats[..., -a:]
    # Single bf16 materialization of `feat`, reused by img_projection and Mattn.
    feat = jnp.concatenate(
        [cand_vis, candidate_dep_normal, cand_angle], axis=-1
    ).astype(jnp.bfloat16)

    h_t, _sv, attended_language, attended_visual, language_attn_probs = \
        vln_bert_stub(params, state_feats, lang_mask, vis_mask, feat)

    # vis_lang_LayerNorm(attended_language * attended_visual)
    vis_lang_feat = mul_ln(attended_language, attended_visual,
                           params["vis_lang_ln_g"], params["vis_lang_ln_b"])

    # state_proj = state_LayerNorm(Linear(cat(h_t, vis_lang_feat))) with split
    # weights (no wrapper concat).
    state_proj = fused_linear_ln(
        [h_t, vis_lang_feat],
        [params["sp_w_h"], params["sp_w_v"]],
        params["state_proj_b"], params["state_ln_g"], params["state_ln_b"],
        use_tanh=False)

    # Mattn scoring over candidates.
    logit, mw_score = mattn_score(state_proj, feat, params["mattn_w"], vis_mask)

    return state_proj, logit, language_attn_probs, mw_score


def init_params(key, hidden, angle_feat_size, feat_dim):
    keys = jax.random.split(key, 6)
    h, a = hidden, angle_feat_size
    std = 0.02
    bf = jnp.bfloat16
    return {
        # action_state_project weight split: [W_sent ; W_act]
        "asp_w_sent": (std * jax.random.normal(keys[0], (h, h))).astype(bf),
        "asp_w_act": (std * jax.random.normal(keys[1], (a, h))).astype(bf),
        "asp_b": jnp.zeros((h,), jnp.float32),
        "action_ln_g": jnp.ones((h,), jnp.float32),
        "action_ln_b": jnp.zeros((h,), jnp.float32),
        "img_proj_w": (std * jax.random.normal(keys[2], (feat_dim, h))).astype(bf),
        "img_proj_b": jnp.zeros((h,), jnp.float32),
        "cand_ln_g": jnp.ones((h,), jnp.float32),
        "cand_ln_b": jnp.zeros((h,), jnp.float32),
        "vis_lang_ln_g": jnp.ones((h,), jnp.float32),
        "vis_lang_ln_b": jnp.zeros((h,), jnp.float32),
        # state_proj weight split: [W_h ; W_vislang]
        "sp_w_h": (std * jax.random.normal(keys[3], (h, h))).astype(bf),
        "sp_w_v": (std * jax.random.normal(keys[4], (h, h))).astype(bf),
        "state_proj_b": jnp.zeros((h,), jnp.float32),
        "state_ln_g": jnp.ones((h,), jnp.float32),
        "state_ln_b": jnp.zeros((h,), jnp.float32),
        "mattn_w": (std * jax.random.normal(keys[5], (feat_dim, h))).astype(bf),
    }


if __name__ == "__main__":
    # Small synthetic shapes consistent with the forward pass.
    # H=128 keeps the hidden axis lane-dense even at toy scale.
    B, L, C = 2, 8, 8          # batch, language tokens, candidates
    H, A = 128, 8              # hidden size, angle_feat_size
    F, D = 32, 8               # candidate visual feat dim (non-angle), depth-normal dim
    FEAT_DIM = F + D + A       # dim of cat(cand_vis, dep_normal, angle)

    root = jax.random.PRNGKey(0)
    k_sent, k_act, k_cand, k_dep, k_par = jax.random.split(root, 5)

    sentence = jax.random.normal(k_sent, (B, L, H), jnp.float32)
    action_feats = jax.random.normal(k_act, (B, A), jnp.float32)
    cand_feats = jax.random.normal(k_cand, (B, C, F + A), jnp.float32)
    candidate_dep_normal = jax.random.normal(k_dep, (B, C, D), jnp.float32)
    lang_mask = jnp.ones((B, L), jnp.float32)
    vis_mask = jnp.concatenate(
        [jnp.ones((B, C - 2), jnp.float32), jnp.zeros((B, 2), jnp.float32)], axis=1)

    params = init_params(k_par, H, A, FEAT_DIM)

    state_proj, logit, language_attn_probs, mw_score = vlnbert_visual_forward(
        params, sentence, lang_mask, vis_mask,
        action_feats, cand_feats, candidate_dep_normal, angle_feat_size=A)

    jax.block_until_ready((state_proj, logit, language_attn_probs, mw_score))
    assert state_proj.shape == (B, H)
    assert logit.shape == (B, C)
    assert language_attn_probs.shape == (B, L)
    assert mw_score.shape == (B, C)
    assert bool(jnp.all(jnp.isfinite(state_proj)))
    assert bool(jnp.all(jnp.isfinite(mw_score)))
    print("KERNEL_OK")
</pallas_src>

<mosaic_0001>
module attributes {stable_mosaic.version = 11 : i64} {
  func.func @_fused_linear_ln_kernel(%arg0: i32, %arg1: memref<16x128xbf16, #tpu.memory_space<vmem>>, %arg2: memref<16x8xbf16, #tpu.memory_space<vmem>>, %arg3: memref<128x128xbf16, #tpu.memory_space<vmem>>, %arg4: memref<8x128xbf16, #tpu.memory_space<vmem>>, %arg5: memref<1x128xf32, #tpu.memory_space<vmem>>, %arg6: memref<1x128xf32, #tpu.memory_space<vmem>>, %arg7: memref<1x128xf32, #tpu.memory_space<vmem>>, %arg8: memref<16x128xf32, #tpu.memory_space<vmem>>) attributes {dimension_semantics = [#tpu.dimension_semantics<parallel>], iteration_bounds = array<i64: 1>, scalar_prefetch = 0 : i64, scratch_operands = 0 : i64, tpu.core_type = #tpu.core_type<tc>, window_params = [{transform_indices = @transform_0, window_bounds = array<i64: 16, 128>}, {transform_indices = @transform_1, window_bounds = array<i64: 16, 8>}, {pipeline_mode = #tpu.pipeline_mode<synchronous>, transform_indices = @transform_2, window_bounds = array<i64: 128, 128>}, {pipeline_mode = #tpu.pipeline_mode<synchronous>, transform_indices = @transform_3, window_bounds = array<i64: 8, 128>}, {pipeline_mode = #tpu.pipeline_mode<synchronous>, transform_indices = @transform_4, window_bounds = array<i64: 1, 128>}, {pipeline_mode = #tpu.pipeline_mode<synchronous>, transform_indices = @transform_5, window_bounds = array<i64: 1, 128>}, {pipeline_mode = #tpu.pipeline_mode<synchronous>, transform_indices = @transform_6, window_bounds = array<i64: 1, 128>}, {transform_indices = @transform_7, window_bounds = array<i64: 16, 128>}]} {
    %c0 = arith.constant 0 : index
    %c0_0 = arith.constant 0 : index
    %0 = vector.load %arg1[%c0, %c0_0] : memref<16x128xbf16, #tpu.memory_space<vmem>>, vector<16x128xbf16>
    %c0_1 = arith.constant 0 : index
    %c0_2 = arith.constant 0 : index
    %1 = vector.load %arg3[%c0_1, %c0_2] : memref<128x128xbf16, #tpu.memory_space<vmem>>, vector<128x128xbf16>
    %cst = arith.constant dense<0.000000e+00> : vector<16x128xf32>
    %2 = tpu.matmul %0, %1, %cst {dimension_numbers = #tpu.dot_dimension_numbers<[1], [0], [0], [1], [0, 0, 1, 1], [], []>} : vector<16x128xbf16>, vector<128x128xbf16>, vector<16x128xf32> -> vector<16x128xf32>
    %c0_3 = arith.constant 0 : index
    %c0_4 = arith.constant 0 : index
    %3 = vector.load %arg2[%c0_3, %c0_4] : memref<16x8xbf16, #tpu.memory_space<vmem>>, vector<16x8xbf16>
    %c0_5 = arith.constant 0 : index
    %c0_6 = arith.constant 0 : index
    %4 = vector.load %arg4[%c0_5, %c0_6] : memref<8x128xbf16, #tpu.memory_space<vmem>>, vector<8x128xbf16>
    %cst_7 = arith.constant dense<0.000000e+00> : vector<16x128xf32>
    %5 = tpu.matmul %3, %4, %cst_7 {dimension_numbers = #tpu.dot_dimension_numbers<[1], [0], [0], [1], [0, 0, 1, 1], [], []>} : vector<16x8xbf16>, vector<8x128xbf16>, vector<16x128xf32> -> vector<16x128xf32>
    %6 = arith.addf %2, %5 : vector<16x128xf32>
    %c0_8 = arith.constant 0 : index
    %c0_9 = arith.constant 0 : index
    %7 = vector.load %arg5[%c0_8, %c0_9] : memref<1x128xf32, #tpu.memory_space<vmem>>, vector<1x128xf32>
    %8 = vector.broadcast %7 : vector<1x128xf32> to vector<16x128xf32>
    %9 = arith.addf %6, %8 : vector<16x128xf32>
    %10 = math.tanh %9 : vector<16x128xf32>
    %cst_10 = arith.constant dense<0.000000e+00> : vector<16xf32>
    %11 = vector.multi_reduction <add>, %10, %cst_10 [1] : vector<16x128xf32> to vector<16xf32>
    %12 = vector.shape_cast %11 : vector<16xf32> to vector<16x1xf32>
    %cst_11 = arith.constant 1.280000e+02 : f32
    %13 = vector.broadcast %cst_11 : f32 to vector<16x1xf32>
    %14 = arith.divf %12, %13 : vector<16x1xf32>
    %15 = arith.mulf %10, %10 : vector<16x128xf32>
    %cst_12 = arith.constant dense<0.000000e+00> : vector<16xf32>
    %16 = vector.multi_reduction <add>, %15, %cst_12 [1] : vector<16x128xf32> to vector<16xf32>
    %17 = vector.shape_cast %16 : vector<16xf32> to vector<16x1xf32>
    %cst_13 = arith.constant 1.280000e+02 : f32
    %18 = vector.broadcast %cst_13 : f32 to vector<16x1xf32>
    %19 = arith.divf %17, %18 : vector<16x1xf32>
    %20 = arith.mulf %14, %14 : vector<16x1xf32>
    %21 = arith.subf %19, %20 : vector<16x1xf32>
    %cst_14 = arith.constant 0.000000e+00 : f32
    %22 = vector.broadcast %cst_14 : f32 to vector<16x1xf32>
    %23 = arith.maximumf %21, %22 : vector<16x1xf32>
    %cst_15 = arith.constant 9.99999996E-13 : f32
    %24 = vector.broadcast %cst_15 : f32 to vector<16x1xf32>
    %25 = arith.addf %23, %24 : vector<16x1xf32>
    %26 = math.rsqrt %25 : vector<16x1xf32>
    %c0_16 = arith.constant 0 : index
    %c0_17 = arith.constant 0 : index
    %27 = vector.load %arg6[%c0_16, %c0_17] : memref<1x128xf32, #tpu.memory_space<vmem>>, vector<1x128xf32>
    %28 = vector.broadcast %14 : vector<16x1xf32> to vector<16x128xf32>
    %29 = arith.subf %10, %28 : vector<16x128xf32>
    %30 = vector.broadcast %26 : vector<16x1xf32> to vector<16x128xf32>
    %31 = arith.mulf %29, %30 : vector<16x128xf32>
    %32 = vector.broadcast %27 : vector<1x128xf32> to vector<16x128xf32>
    %33 = arith.mulf %32, %31 : vector<16x128xf32>
    %c0_18 = arith.constant 0 : index
    %c0_19 = arith.constant 0 : index
    %34 = vector.load %arg7[%c0_18, %c0_19] : memref<1x128xf32, #tpu.memory_space<vmem>>, vector<1x128xf32>
    %35 = vector.broadcast %34 : vector<1x128xf32> to vector<16x128xf32>
    %36 = arith.addf %33, %35 : vector<16x128xf32>
    %c0_20 = arith.constant 0 : index
    %c0_21 = arith.constant 0 : index
    %37 = vector.load %arg8[%c0_20, %c0_21] : memref<16x128xf32, #tpu.memory_space<vmem>>, vector<16x128xf32>
    tpu.vector_store %arg8[%c0_20, %c0_21], %36 {strides = array<i32>} : memref<16x128xf32, #tpu.memory_space<vmem>>, vector<16x128xf32>,
    return
  }
  func.func @transform_0(%arg0: i32) -> (i32, i32) {
    %c0_i32 = arith.constant 0 : i32
    %c0_i32_0 = arith.constant 0 : i32
    return %arg0, %c0_i32 : i32, i32
  }
  func.func @transform_1(%arg0: i32) -> (i32, i32) {
    %c0_i32 = arith.constant 0 : i32
    %c0_i32_0 = arith.constant 0 : i32
    return %arg0, %c0_i32 : i32, i32
  }
  func.func @transform_2(%arg0: i32) -> (i32, i32) {
    %c0_i32 = arith.constant 0 : i32
    %c0_i32_0 = arith.constant 0 : i32
    %c0_i32_1 = arith.constant 0 : i32
    return %c0_i32, %c0_i32_0 : i32, i32
  }
  func.func @transform_3(%arg0: i32) -> (i32, i32) {
    %c0_i32 = arith.constant 0 : i32
    %c0_i32_0 = arith.constant 0 : i32
    %c0_i32_1 = arith.constant 0 : i32
    return %c0_i32, %c0_i32_0 : i32, i32
  }
  func.func @transform_4(%arg0: i32) -> (i32, i32) {
    %c0_i32 = arith.constant 0 : i32
    %c0_i32_0 = arith.constant 0 : i32
    %c0_i32_1 = arith.constant 0 : i32
    return %c0_i32, %c0_i32_0 : i32, i32
  }
  func.func @transform_5(%arg0: i32) -> (i32, i32) {
    %c0_i32 = arith.constant 0 : i32
    %c0_i32_0 = arith.constant 0 : i32
    %c0_i32_1 = arith.constant 0 : i32
    return %c0_i32, %c0_i32_0 : i32, i32
  }
  func.func @transform_6(%arg0: i32) -> (i32, i32) {
    %c0_i32 = arith.constant 0 : i32
    %c0_i32_0 = arith.constant 0 : i32
    %c0_i32_1 = arith.constant 0 : i32
    return %c0_i32, %c0_i32_0 : i32, i32
  }
  func.func @transform_7(%arg0: i32) -> (i32, i32) {
    %c0_i32 = arith.constant 0 : i32
    %c0_i32_0 = arith.constant 0 : i32
    return %arg0, %c0_i32 : i32, i32
  }
}

</mosaic_0001>

<bundles_post_ra>
// kernel: tpu_custom_call.1
= control target key start
LH: loop header
LB: loop body
LE: loop exit
PB: predicated region body
PF: predicated region fallthrough
CT: control target
= control target key end

     0   :  { %12 = vsyncpa [#allocation3], 0  ;;  %s504_s0 = inlined_call_operand.vmem [shape: bf16[16,128], index: 0, kind: input, shape index: {}]   ;;  %s505_s1 = inlined_call_operand.vmem [shape: bf16[16,8], index: 1, kind: input, shape index: {}]   ;;  %s506_s2 = inlined_call_operand.hbm [shape: bf16[128,128], index: 2, kind: input, shape index: {}]   ;;  %s507_s3 = inlined_call_operand.vmem [shape: bf16[8,128], index: 3, kind: input, shape index: {}]   ;;  %s508_s4 = inlined_call_operand.vmem [shape: f32[1,128], index: 4, kind: input, shape index: {}]   ;;  %s509_s5 = inlined_call_operand.vmem [shape: f32[1,128], index: 5, kind: input, shape index: {}]   ;;  %s510_s6 = inlined_call_operand.vmem [shape: f32[1,128], index: 6, kind: input, shape index: {}]   ;;  %s511_s7 = inlined_call_operand.hbm [shape: f32[16,128], index: 7, kind: output, shape index: {}]  }
   0x1   :  { %13 = vsyncpa [#allocation4], 0  ;;  %s414_s24 = smov [#allocation2]   ;;  %s366_s28 = scalar_lea.hbm %s506_s2, 1024 }
   0x2   :  { %s23_s25 = sshll.u32 %s414_s24, 4  ;;  %p367_p0 = scmp.ne.s32.totalorder %s506_s2, %s366_s28  ;;  %s24_s25 = int_to_ptr.vmem [resolvable:$true] %s23_s25 }
   0x3   :  { %p370_p1 = scmp.lt.u32.totalorder %s366_s28, %s506_s2 }
   0x5   :  { %p372_p2 = pnand %p370_p1, %p367_p0 }
   0x7   :  { %375 = shalt.err (!%p372_p2)
}
   0x8   :  { %s376_s10 = scalar_lea.vmem %s24_s25, 1024  ;;  %p381_p4 = scmp.lt.s32.totalorder %s24_s25, %s24_s25 }
   0x9   :  { %p377_p3 = scmp.ne.s32.totalorder %s24_s25, %s376_s10  ;;  %p382_p5 = scmp.lt.s32.totalorder %s376_s10, %s376_s10 }
   0xb   :  { %p383_p6 = por %p382_p5, %p381_p4 }
   0xd   :  { %p384_p7 = pnand %p383_p6, %p377_p3 }
   0xf   :  { %387 = shalt.err (!%p384_p7)
}
  0x10   :  { %s415_s11 = smov 64   ;;  %s416_s12 = smov 4  }
  0x11   :  { %29 = dma.hbm_to_vmem [thread:$0]  %s506_s2, 1024, %s24_s25, [#allocation3], %s415_s11, %s415_s11, %s416_s12  }
  0x12   :  { %410 = dma.done.wait [#allocation3], 1024  }
  0x13   :  { %411 = vsyncadd [#allocation3], 4294966272  ;;  %v417_v0 = vmov 0.0   ;;  %vm418_vm0 = vmmov 0   ;;  %v348_v1 = vld [vmem:[#allocation2] sm:$0xff]   ;;  %v349_v2 = vld [vmem:[#allocation2 + $0x8] sm:$0xff]  }
  0x14   :  { %320 = vmatprep.subr.bf16.mxu1 %v417_v0  ;;  %314 = vmatprep.subr.bf16.mxu0 %v417_v0  ;;  %vm72_vm1 = vcmask 1043456   ;;  %v350_v3 = vld [vmem:[#allocation2 + $0x10] sm:$0xff]   ;;  %v62_v4 = vld [vmem:[%s507_s3] sm:$0xf]  ;;  %vm68_vm2 = vcmask 64512   ;;  %v351_v7 = vld [vmem:[#allocation2 + $0x18] sm:$0xff]  }
  0x15   :  { %316 = vmatprep.mubr.msk.bf16.mxu0 %vm418_vm0, %v417_v0  ;;  %336 = vmatprep.mubr.msk.bf16.mxu1 %vm418_vm0, %v417_v0  ;;  %v74_v5 = vsel %vm72_vm1, %v62_v4, 0  ;;  %v355_v6 = vld [vmem:[%s505_s1] sm:$0xff]   ;;  %v353_v9 = vld [vmem:[#allocation2 + $0x28] sm:$0xff]   ;;  %v354_v10 = vld [vmem:[#allocation2 + $0x30] sm:$0xff]   ;;  %s419_s22 = smov [#allocation5]  }
  0x16   :  { %321 = vmatpush3.bf16.msra.mxu1 %v348_v1  ;;  %315 = vmatpush3.bf16.msra.mxu0 %v74_v5  ;;  %v352_v8 = vld [vmem:[#allocation2 + $0x20] sm:$0xff]   ;;  %v356_v11 = vld [vmem:[#allocation2 + $0x38] sm:$0xff]   ;;  %s277_s23 = sshll.u32 %s419_s22, 4  ;;  %s278_s23 = int_to_ptr.vmem [resolvable:$true] %s277_s23 }
  0x17   :  { %322 = vmatprep.subr.bf16.mxu1 %v417_v0  ;;  %v357_v12 = vld [vmem:[%s504_s0] sm:$0xff]   ;;  %s388_s24 = scalar_lea.vmem %s278_s23, 256  ;;  %p393_p9 = scmp.lt.s32.totalorder %s278_s23, %s278_s23 }
  0x18   :  { %v300_v18 = vld [vmem:[%s508_s4] ss:$0 sm:$0xff]  ;;  %p389_p8 = scmp.ne.s32.totalorder %s278_s23, %s388_s24  ;;  %p394_p10 = scmp.lt.s32.totalorder %s388_s24, %s388_s24 }
  0x19   :  { %317 = vmatmul.mubr.msk.bf16.vlgmr.msra.gmra.mrb[0].mxu0 %vm68_vm2, %v355_v6  ;;  %v301_v48 = vld [vmem:[%s509_s5] ss:$0 sm:$0xff] }
  0x1a   :  { %323 = vmatpush3.bf16.msra.mxu1 %v349_v2  ;;  %v302_v50 = vld [vmem:[%s510_s6] ss:$0 sm:$0xff]  ;;  %p395_p11 = por %p394_p10, %p393_p9 }
  0x1b   :  { %324 = vmatprep.subr.bf16.mxu1 %v417_v0 }
  0x1c   :  { %p396_p12 = pnand %p395_p11, %p389_p8 }
  0x1e   :  { %325 = vmatpush3.bf16.msra.mxu1 %v350_v3 }
  0x1f   :  { %326 = vmatprep.subr.bf16.mxu1 %v417_v0 }
  0x22   :  { %327 = vmatpush3.bf16.msra.mxu1 %v351_v7 }
  0x23   :  { %328 = vmatprep.subr.bf16.mxu1 %v417_v0 }
  0x26   :  { %329 = vmatpush3.bf16.msra.mxu1 %v352_v8 }
  0x27   :  { %330 = vmatprep.subr.bf16.mxu1 %v417_v0 }
  0x2a   :  { %331 = vmatpush3.bf16.msra.mxu1 %v353_v9 }
  0x2b   :  { %332 = vmatprep.subr.bf16.mxu1 %v417_v0 }
  0x2e   :  { %333 = vmatpush3.bf16.msra.mxu1 %v354_v10 }
  0x2f   :  { %334 = vmatprep.subr.bf16.mxu1 %v417_v0 }
  0x32   :  { %335 = vmatpush3.bf16.msra.mxu1 %v356_v11 }
  0x35   :  { %337 = vmatmul.mubr.bf16.vlgmr.msra.gmra.mrb[0].mxu1 %v357_v12 }
  0xec   :  { %v110_v13 = vpop.f32.mrb[0].mxu0 }
  0xed   :  { %v318_v14 = vpop.f32.mrb[1].mxu0 }
  0xee   :  { %v113_v15 = vpop.f32.mrb[2].mxu0 }
  0xef   :  { %v319_v16 = vpop.f32.mrb[3].mxu0 }
 0x108   :  { %v205_v17 = vpop.f32.mrb[0].mxu1 }
 0x109   :  { %v206_v19 = vadd.f32 %v205_v17, %v110_v13  ;;  %v338_v20 = vpop.f32.mrb[1].mxu1 }
 0x10a   :  { %v208_v21 = vpop.f32.mrb[2].mxu1 }
 0x10b   :  { %v219_v22 = vadd.f32 %v300_v18, %v206_v19  ;;  %v209_v23 = vadd.f32 %v208_v21, %v113_v15  ;;  %v339_v24 = vpop.f32.mrb[3].mxu1 }
 0x10d   :  { %358 = vtanh.f32 %v219_v22  ;;  %v220_v25 = vadd.f32 %v300_v18, %v209_v23 }
 0x10f   :  { %360 = vtanh.f32 %v220_v25 }
 0x117   :  { %v359_v26 = vpop.eup %358 }
 0x118   :  { %223 = vadd.xlane.f32.xlu0 %v359_v26  ;;  %v230_v27 = vmul.f32 %v359_v26, %v359_v26 }
 0x119   :  { %v361_v28 = vpop.eup %360 }
 0x11a   :  { %232 = vadd.xlane.f32.xlu1 %v230_v27  ;;  %v231_v29 = vmul.f32 %v361_v28, %v361_v28 }
 0x11c   :  { %225 = vadd.xlane.f32.xlu0 %v361_v28 }
 0x11e   :  { %234 = vadd.xlane.f32.xlu1 %v231_v29 }
 0x1a5   :  { %v224_v30 = vpop.xlane.xlu0 %223 }
 0x1a6   :  { %v228_v31 = vmul.f32 0.0078125, %v224_v30 }
 0x1a7   :  { %v233_v32 = vpop.xlane.xlu1 %232 }
 0x1a8   :  { %v238_v33 = vmul.f32 %v228_v31, %v228_v31  ;;  %v236_v34 = vmul.f32 0.0078125, %v233_v32  ;;  %v249_v46 = vsub.f32 %v359_v26, %v228_v31 }
 0x1a9   :  { %v226_v35 = vpop.xlane.xlu0 %225 }
 0x1aa   :  { %v240_v36 = vsub.f32 %v236_v34, %v238_v33  ;;  %v229_v37 = vmul.f32 0.0078125, %v226_v35 }
 0x1ab   :  { %v235_v38 = vpop.xlane.xlu1 %234 }
 0x1ac   :  { %v242_v39 = vmax.f32 %v240_v36, 0.0  ;;  %v239_v40 = vmul.f32 %v229_v37, %v229_v37  ;;  %v237_v41 = vmul.f32 0.0078125, %v235_v38  ;;  %v250_v51 = vsub.f32 %v361_v28, %v229_v37 }
 0x1ae   :  { %v244_v42 = vadd.f32 1e-12, %v242_v39  ;;  %v241_v43 = vsub.f32 %v237_v41, %v239_v40 }
 0x1b0   :  { %362 = vrsqrt.f32 %v244_v42  ;;  %v243_v44 = vmax.f32 %v241_v43, 0.0 }
 0x1b2   :  { %v245_v45 = vadd.f32 1e-12, %v243_v44 }
 0x1b4   :  { %364 = vrsqrt.f32 %v245_v45 }
 0x1ba   :  { %v363_v47 = vpop.eup %362 }
 0x1bb   :  { %v251_v49 = vmul.f32 %v363_v47, %v249_v46 }
 0x1bd   :  { %v259_v52 = vmul.f32 %v301_v48, %v251_v49 }
 0x1be   :  { %v365_v53 = vpop.eup %364 }
 0x1bf   :  { %v252_v54 = vmul.f32 %v365_v53, %v250_v51  ;;  %v268_v55 = vadd.f32 %v302_v50, %v259_v52 }
 0x1c1   :  { %v260_v56 = vmul.f32 %v301_v48, %v252_v54  ;;  %270 = vst [vmem:[#allocation5] sm:$0xff] %v268_v55 }
 0x1c3   :  { %v269_v57 = vadd.f32 %v302_v50, %v260_v56 }
 0x1c5   :  { %271 = vst [vmem:[#allocation5 + $0x8] sm:$0xff] %v269_v57 }
 0x1c6   :  { %399 = shalt.err (!%p396_p12)
}
 0x1c7   :  { %s400_s25 = scalar_lea.hbm %s511_s7, 256 }
 0x1c8   :  { %p401_p13 = scmp.ne.s32.totalorder %s511_s7, %s400_s25  ;;  %p404_p0 = scmp.lt.u32.totalorder %s400_s25, %s511_s7 }
 0x1ca   :  { %p406_p1 = pnand %p404_p0, %p401_p13 }
 0x1cc   :  { %409 = shalt.err (!%p406_p1)
}
 0x1cd   :  { %s420_s30 = smov 128   ;;  %s421_s8 = smov 8  }
 0x1ce   :  { %283 = dma.vmem_to_hbm [thread:$0]  %s278_s23, 256, %s511_s7, [#allocation4], %s420_s30, %s420_s30, %s421_s8  }
 0x1cf   :  { %412 = dma.done.wait [#allocation4], 256  }
 0x1d0   :  { %413 = vsyncadd [#allocation4], 4294967040 }
 0x1d1   :  { %287 = vsyncpa [#allocation3], 1 }
 0x1d2   :  { %288 = vsyncpa [#allocation4], 1 }

</bundles_post_ra>
